<compile_context>
chip_gen: v5e
topology: v5e:2x2
jax: 0.10.0
libtpu: 0.0.40
codegen_flags: <defaults>
</compile_context>

<pallas_src>
import jax
import jax.numpy as jnp
from jax.experimental import pallas as pl
from jax.experimental.pallas import tpu as pltpu


# ----------------------------------------------------------------------------
# Pallas kernel
# ----------------------------------------------------------------------------
def _rope_cos_sin_kernel(pos_ref, inv_ref, cos_ref, sin_ref):
    # pos_ref: (ts, 1) fp32 positions for this (batch, seq-tile) block.
    # inv_ref: (1, dim) fp32 inverse frequencies, already duplicated so that
    #          pos * inv == cat(freqs, freqs, -1) of the reference module.
    emb = pos_ref[...] * inv_ref[...]                  # (ts, dim)  VPU broadcast
    cos_ref[...] = jnp.cos(emb).astype(cos_ref.dtype)  # EUP
    sin_ref[...] = jnp.sin(emb).astype(sin_ref.dtype)  # EUP


def gemma_rotary_embedding(x, position_ids, dim, base=10000.0, *, seq_tile=512):
    """Pallas equivalent of GemmaRotaryEmbedding.forward.

    x:            only its dtype is used (matches the torch module).
    position_ids: (B, S) integer positions.
    Returns (cos, sin), each (B, S, dim) in x.dtype.
    """
    assert dim % 2 == 0, "RoPE head_dim must be even"
    B, S = position_ids.shape
    out_dtype = x.dtype

    # inv_freq buffer (computed once, exactly like the module's __init__), then
    # duplicated along the lane axis so the kernel does a single broadcast mul
    # instead of materializing cat(freqs, freqs).
    inv_freq = 1.0 / (base ** (jnp.arange(0, dim, 2, dtype=jnp.float32) / dim))
    inv_full = jnp.concatenate([inv_freq, inv_freq])[None, :]        # (1, dim)

    # Positions as an fp32 column vector per (batch, tile) block.
    pos = position_ids.astype(jnp.float32)[:, :, None]               # (B, S, 1)

    # Sequence tiling: bound VMEM and pipeline DMA for long S; fall back to a
    # single full-S block when S is small or not tile-divisible.
    # TODO(synk): ragged (non-divisible) seq tiling via masked boundary blocks.
    ts = seq_tile if (S > seq_tile and S % seq_tile == 0) else S
    grid = (B, S // ts)

    cos, sin = pl.pallas_call(
        _rope_cos_sin_kernel,
        grid=grid,
        in_specs=[
            pl.BlockSpec((None, ts, 1), lambda b, s: (b, s, 0)),     # positions
            pl.BlockSpec((1, dim), lambda b, s: (0, 0)),             # inv_freq
        ],
        out_specs=(
            pl.BlockSpec((None, ts, dim), lambda b, s: (b, s, 0)),   # cos
            pl.BlockSpec((None, ts, dim), lambda b, s: (b, s, 0)),   # sin
        ),
        out_shape=(
            jax.ShapeDtypeStruct((B, S, dim), out_dtype),
            jax.ShapeDtypeStruct((B, S, dim), out_dtype),
        ),
        compiler_params=pltpu.CompilerParams(
            dimension_semantics=("parallel", "parallel")),
    )(pos, inv_full)
    return cos, sin


# ----------------------------------------------------------------------------
# Pure-JAX reference mirroring the PyTorch module, for a correctness check.
# ----------------------------------------------------------------------------
def reference_rotary(x, position_ids, dim, base=10000.0):
    B = position_ids.shape[0]
    inv_freq = 1.0 / (base ** (jnp.arange(0, dim, 2, dtype=jnp.float32) / dim))
    inv_exp = jnp.broadcast_to(inv_freq[None, :, None], (B, dim // 2, 1))
    pos_exp = position_ids[:, None, :].astype(jnp.float32)
    freqs = jnp.matmul(inv_exp, pos_exp).transpose(0, 2, 1)          # (B, S, dim/2)
    emb = jnp.concatenate([freqs, freqs], axis=-1)                   # (B, S, dim)
    return jnp.cos(emb).astype(x.dtype), jnp.sin(emb).astype(x.dtype)


# ----------------------------------------------------------------------------
if __name__ == "__main__":
    key = jax.random.PRNGKey(0)

    # --- small case: single full-sequence block per batch --------------------
    B, NH, S, D = 2, 4, 16, 128
    k1, k2 = jax.random.split(key)
    x = jax.random.normal(k1, (B, NH, S, D), jnp.float32)
    position_ids = jnp.broadcast_to(jnp.arange(S, dtype=jnp.int32)[None, :], (B, S))

    cos, sin = gemma_rotary_embedding(x, position_ids, dim=D, base=10000.0)
    jax.block_until_ready((cos, sin))
    ref_cos, ref_sin = reference_rotary(x, position_ids, D, 10000.0)
    assert cos.shape == (B, S, D) and sin.shape == (B, S, D)
    assert jnp.allclose(cos, ref_cos, atol=1e-5, rtol=1e-5)
    assert jnp.allclose(sin, ref_sin, atol=1e-5, rtol=1e-5)

    # --- larger case: exercises seq tiling (grid=(2,4)) and bf16 output cast --
    S2 = 1024
    x2 = jax.random.normal(k2, (B, NH, S2, D), jnp.bfloat16)
    pos2 = jnp.broadcast_to(jnp.arange(S2, dtype=jnp.int32)[None, :] + 3, (B, S2))
    cos2, sin2 = gemma_rotary_embedding(x2, pos2, dim=D, base=10000.0, seq_tile=256)
    jax.block_until_ready((cos2, sin2))
    ref_cos2, ref_sin2 = reference_rotary(x2, pos2, D, 10000.0)
    assert cos2.dtype == jnp.bfloat16 and sin2.dtype == jnp.bfloat16
    assert jnp.allclose(cos2.astype(jnp.float32), ref_cos2.astype(jnp.float32),
                        atol=2e-2, rtol=2e-2)
    assert jnp.allclose(sin2.astype(jnp.float32), ref_sin2.astype(jnp.float32),
                        atol=2e-2, rtol=2e-2)

    print("KERNEL_OK")
</pallas_src>

<mosaic_0001>
module attributes {stable_mosaic.version = 11 : i64} {
  func.func @_rope_cos_sin_kernel(%arg0: i32, %arg1: i32, %arg2: memref<1x16x1xf32, #tpu.memory_space<vmem>>, %arg3: memref<1x128xf32, #tpu.memory_space<vmem>>, %arg4: memref<1x16x128xf32, #tpu.memory_space<vmem>>, %arg5: memref<1x16x128xf32, #tpu.memory_space<vmem>>) attributes {dimension_semantics = [#tpu.dimension_semantics<parallel>, #tpu.dimension_semantics<parallel>], iteration_bounds = array<i64: 2, 1>, scalar_prefetch = 0 : i64, scratch_operands = 0 : i64, tpu.core_type = #tpu.core_type<tc>, window_params = [{transform_indices = @transform_0, window_bounds = array<i64: 1, 16, 1>}, {pipeline_mode = #tpu.pipeline_mode<synchronous>, transform_indices = @transform_1, window_bounds = array<i64: 1, 128>}, {transform_indices = @transform_2, window_bounds = array<i64: 1, 16, 128>}, {transform_indices = @transform_3, window_bounds = array<i64: 1, 16, 128>}]} {
    %c0 = arith.constant 0 : index
    %c0_0 = arith.constant 0 : index
    %c0_1 = arith.constant 0 : index
    %0 = vector.load %arg2[%c0, %c0_0, %c0_1] : memref<1x16x1xf32, #tpu.memory_space<vmem>>, vector<1x16x1xf32>
    %1 = vector.shape_cast %0 : vector<1x16x1xf32> to vector<16x1xf32>
    %c0_2 = arith.constant 0 : index
    %c0_3 = arith.constant 0 : index
    %2 = vector.load %arg3[%c0_2, %c0_3] : memref<1x128xf32, #tpu.memory_space<vmem>>, vector<1x128xf32>
    %3 = vector.broadcast %1 : vector<16x1xf32> to vector<16x128xf32>
    %4 = vector.broadcast %2 : vector<1x128xf32> to vector<16x128xf32>
    %5 = arith.mulf %3, %4 : vector<16x128xf32>
    %6 = math.cos %5 : vector<16x128xf32>
    %c0_4 = arith.constant 0 : index
    %c0_5 = arith.constant 0 : index
    %c0_6 = arith.constant 0 : index
    %7 = vector.load %arg4[%c0_4, %c0_5, %c0_6] : memref<1x16x128xf32, #tpu.memory_space<vmem>>, vector<1x16x128xf32>
    %8 = vector.shape_cast %7 : vector<1x16x128xf32> to vector<16x128xf32>
    %9 = vector.shape_cast %6 : vector<16x128xf32> to vector<1x16x128xf32>
    tpu.vector_store %arg4[%c0_4, %c0_5, %c0_6], %9 {strides = array<i32>} : memref<1x16x128xf32, #tpu.memory_space<vmem>>, vector<1x16x128xf32>,
    %10 = math.sin %5 : vector<16x128xf32>
    %c0_7 = arith.constant 0 : index
    %c0_8 = arith.constant 0 : index
    %c0_9 = arith.constant 0 : index
    %11 = vector.load %arg5[%c0_7, %c0_8, %c0_9] : memref<1x16x128xf32, #tpu.memory_space<vmem>>, vector<1x16x128xf32>
    %12 = vector.shape_cast %11 : vector<1x16x128xf32> to vector<16x128xf32>
    %13 = vector.shape_cast %10 : vector<16x128xf32> to vector<1x16x128xf32>
    tpu.vector_store %arg5[%c0_7, %c0_8, %c0_9], %13 {strides = array<i32>} : memref<1x16x128xf32, #tpu.memory_space<vmem>>, vector<1x16x128xf32>,
    return
  }
  func.func @transform_0(%arg0: i32, %arg1: i32) -> (i32, i32, i32) {
    %c0_i32 = arith.constant 0 : i32
    %c0_i32_0 = arith.constant 0 : i32
    return %arg0, %arg1, %c0_i32 : i32, i32, i32
  }
  func.func @transform_1(%arg0: i32, %arg1: i32) -> (i32, i32) {
    %c0_i32 = arith.constant 0 : i32
    %c0_i32_0 = arith.constant 0 : i32
    %c0_i32_1 = arith.constant 0 : i32
    return %c0_i32, %c0_i32_0 : i32, i32
  }
  func.func @transform_2(%arg0: i32, %arg1: i32) -> (i32, i32, i32) {
    %c0_i32 = arith.constant 0 : i32
    %c0_i32_0 = arith.constant 0 : i32
    return %arg0, %arg1, %c0_i32 : i32, i32, i32
  }
  func.func @transform_3(%arg0: i32, %arg1: i32) -> (i32, i32, i32) {
    %c0_i32 = arith.constant 0 : i32
    %c0_i32_0 = arith.constant 0 : i32
    return %arg0, %arg1, %c0_i32 : i32, i32, i32
  }
}

</mosaic_0001>

<bundles_post_ra>
// kernel: tpu_custom_call.1
= control target key start
LH: loop header
LB: loop body
LE: loop exit
PB: predicated region body
PF: predicated region fallthrough
CT: control target
= control target key end

     0   :  { %9 = vsyncpa [#allocation3], 0  ;;  %s1532_s0 = inlined_call_operand.vmem [shape: f32[2,16,1], index: 0, kind: input, shape index: {}]   ;;  %s1533_s1 = inlined_call_operand.vmem [shape: f32[1,128], index: 1, kind: input, shape index: {}]   ;;  %s1534_s2 = inlined_call_operand.hbm [shape: f32[2,16,128], index: 2, kind: output, shape index: {0}]   ;;  %s1535_s3 = inlined_call_operand.hbm [shape: f32[2,16,128], index: 3, kind: output, shape index: {1}]  }
   0x1   :  { %11 = vsyncpa [#allocation3 + $0x1], 0 }
   0x2   :  { %12 = vsyncpa [#allocation5], 0 }
   0x3   :  { %14 = vsyncpa [#allocation5 + $0x1], 0  ;;  %s1255_s12 = smov 0   ;;  %s1257_s13 = smov 0  }
   0x4   :  { %s1259_s14 = smov 0   ;;  %s1261_s15 = smov 0  }
   0x5   :  { %s1263_s16 = smov 0   ;;  %s1265_s17 = smov 0  }
   0x6 LB: > { %s1011_s18 = sadd.s32 4294967295, %s1224_s17   ;;  %s1012_s19 = sadd.s32 4294967294, %s1224_s17   ;;  %s1224_s17 = sphi %s1265_s17, %s20_s17   ;;  %s1220_s16 = sphi %s1263_s16, %s1542_s16   ;;  %s1216_s15 = sphi %s1261_s15, %s1541_s15   ;;  %s1212_s14 = sphi %s1259_s14, %s1540_s14   ;;  %s1208_s13 = sphi %s1257_s13, %s1539_s13   ;;  %s1204_s12 = sphi %s1255_s12, %s1538_s12  }
   0x7   : > { %s32_s20 = sadd.s32 1, %s1220_s16  ;;  %s90_s21 = sadd.s32 1, %s1212_s14 }
   0x8   : > { %p34_p0 = scmp.ge.s32.totalorder %s32_s20, 2  ;;  %p100_p1 = scmp.ne.s32.totalorder %s1212_s14, %s1208_s13 }
   0x9   : > { %p101_p2 = scmp.eq.s32.totalorder %s1011_s18, 1  ;;  %p106_p3 = scmp.ne.s32.totalorder %s1208_s13, %s1204_s12 }
   0xa   : > { %s1544_s20 = smov (%p34_p0, %s32_s20), 0  ;;  %p107_p5 = scmp.eq.s32.totalorder %s1012_s19, 1 }
   0xb   : > { %p1295_p4 = por %p101_p2, %p100_p1  ;;  %s85_s23 = ssub.s32 %s1220_s16, %s1544_s20 }
   0xc   : > { %p1015_p6 = scmp.ge.s32.totalorder %s1224_s17, 1  ;;  %p88_p7 = scmp.eq.s32.totalorder %s85_s23, 0 }
   0xd   : > { %p1302_p8 = por %p107_p5, %p106_p3  ;;  %p169_p9 = scmp.lt.s32.totalorder %s1224_s17, 3 }
   0xe   : > { %s1308_s25 = scalar_select %p88_p7, %s1212_s14, %s90_s21  }
   0xf   : > { %p170_p10 = pnand %p1015_p6, %p169_p9 }
  0x10   : > { %p203_p11 = scmp.lt.s32.totalorder (!%p170_p10), %s1216_s15, 1  ;;  %s1445_s6 = sand.u32 (!%p170_p10), 1, %s1208_s13  }
  0x11   : > { %173 = sbr.rel (%p170_p10) target bundleno = 275 (0x113), region = 28  ;;  %s1016_s7 = sshll.u32 (!%p170_p10), %s1445_s6, 4 }
  0x12   : > { %s1451_s8 = scalar_lea.vmem (!%p170_p10), [#allocation2], %s1016_s7  ;;  %s1456_s9 = scalar_lea.vmem (!%p170_p10), [#allocation4], %s1016_s7 }
  0x13   : > { %s1041_s10 = sshll.u32 (!%p170_p10), %s1216_s15, 4  ;;  %s874_s21 = sshll.u32 (!%p170_p10), %s1451_s8, 4  ;;  %s1470_s21 = int_to_ptr.vmem [resolvable:$true] %s874_s21 }
  0x14   : > { %s873_s19 = scalar_lea.hbm (!%p170_p10), %s1534_s2, %s1041_s10  ;;  %s893_s28 = sshll.u32 (!%p170_p10), %s1456_s9, 4  ;;  %s1477_s28 = int_to_ptr.vmem [resolvable:$true] %s893_s28 }
  0x15   : > { %s876_s23 = sshll.u32 (!%p170_p10), %s873_s19, 4  ;;  %s1134_s11 = scalar_lea.hbm (!%p170_p10), %s1534_s2, 32  ;;  %s1472_s23 = int_to_ptr.hbm [resolvable:$true] %s876_s23 }
  0x16   : > { %v1226_v0 = vmov 0   ;;  %s204_s26 = scalar_select %p203_p11, %s1216_s15, 1  ;;  %v1113_v3 = vld [vmem:[%s1533_s1] ss:$0 sm:$0xff]  ;;  %v1227_v25 = vmov 683565275  }
  0x17   : > { %1112 = vset.pattern.permute.xlu0 %v1226_v0  ;;  %v1228_v27 = vmov 2475754826   ;;  %v1229_v31 = vmov 2131351028   ;;  %v1230_v34 = vmov 2102212464   ;;  %s892_s15 = scalar_lea.hbm %s1535_s3, %s1041_s10 }
  0x18   : > { %s1040_s27 = sshll.u32 %s204_s26, 4  ;;  %v1231_v37 = vmov 920167782   ;;  %v1232_v40 = vmov 1326507024   ;;  %s895_s29 = sshll.u32 %s892_s15, 4  ;;  %s1479_s29 = int_to_ptr.hbm [resolvable:$true] %s895_s29 }
  0x19   : > { %s210_s30 = scalar_lea.vmem %s1532_s0, %s1040_s27  ;;  %s1128_s4 = sshra.s32 %s1472_s23, 4  ;;  %s1129_s4 = int_to_ptr.hbm [resolvable:$true] %s1128_s4 }
  0x1a   : > { %v214_v1 = vld [vmem:[%s210_s30] sm:$0xff]  ;;  %v215_v2 = vld [vmem:[%s210_s30 + $0x8] sm:$0xff]  ;;  %s855_s30 = scalar_lea.sflag [#allocation3], %s1445_s6  ;;  %s1130_s5 = scalar_lea.hbm %s1129_s4, 16 }
  0x1b   : > { %219 = vperm.xlu0 %1112, %v214_v1   ;;  %p1131_p12 = scmp.ne.s32.totalorder %s1129_s4, %s1130_s5  ;;  %p1135_p1 = scmp.lt.s32.totalorder %s1129_s4, %s1534_s2 }
  0x1c   : > { %p1136_p2 = scmp.lt.s32.totalorder %s1134_s11, %s1130_s5 }
  0x1d   : > { %p1132_p13 = pnand %p1131_p12, %p1295_p4 }
  0x1e   : > { %p1137_p3 = por %p1136_p2, %p1135_p1 }
  0x1f   : > { %p1133_p0 = pneg %p1132_p13 }
  0x21   : > { %p1138_p5 = pnand %p1137_p3, %p1133_p0 }
  0x23   : > { %224 = vperm.xlu0 %1112, %v215_v2  }
  0x8d   : > { %v220_v4 = vpop.permute.xlu0 %219 }
  0x8e   : > { %v1319_v5 = vmul.f32 %v1113_v3, %v220_v4 }
  0x90   : > { %v232_v6 = vand.u32 2147483647, %v1319_v5  ;;  %v235_v7 = vand.u32 2139095040, %v1319_v5 }
  0x92   : > { %v236_v8 = vshrl.u32 %v235_v7, 23  ;;  %v239_v9 = vand.u32 8388607, %v232_v6 }
  0x94   : > { %v1020_v10 = vadd.s32 4294967169, %v236_v8  ;;  %v240_v11 = vor.u32 8388608, %v239_v9 }
  0x95   : > { %v225_v12 = vpop.permute.xlu0 %224 }
  0x96   : > { %v242_v13 = vadd.s32 1, %v1020_v10  ;;  %v1325_v14 = vmul.f32 %v1113_v3, %v225_v12  ;;  %v1327_v15 = vshll.u32 %v240_v11, 8 }
  0x98   : > { %vm243_vm0 = vcmp.gt.s32.totalorder %v242_v13, 0  ;;  %v386_v17 = vand.u32 2147483647, %v1325_v14  ;;  %v389_v18 = vand.u32 2139095040, %v1325_v14  ;;  %v281_v21 = vand.u32 65535, %v1327_v15 }
  0x99   : > { %v244_v16 = vsel %vm243_vm0, %v242_v13, 0  ;;  %v282_v22 = vshrl.u32 %v1327_v15, 16 }
  0x9a   : > { %v246_v19 = vand.u32 31, %v244_v16  ;;  %v390_v23 = vshrl.u32 %v389_v18, 23  ;;  %v245_v24 = vshrl.u32 %v244_v16, 5  ;;  %v1337_v29 = vand.u32 8388607, %v386_v17 }
  0x9c   : > { %v247_v20 = vsub.s32 32, %v246_v19  ;;  %v249_v26 = vshll.u32 %v1227_v25, %v246_v19  ;;  %v252_v28 = vshll.u32 %v1228_v27, %v246_v19  ;;  %v255_v33 = vshll.u32 %v1229_v31, %v246_v19 }
  0x9d   : > { %v258_v36 = vshll.u32 %v1230_v34, %v246_v19  ;;  %v261_v39 = vshll.u32 %v1231_v37, %v246_v19  ;;  %v1023_v45 = vadd.s32 4294967169, %v390_v23  ;;  %vm264_vm1 = vcmp.lt.s32.totalorder %v245_v24, 1 }
  0x9e   : > { %v250_v30 = vshrl.u32 %v1228_v27, %v247_v20  ;;  %v253_v32 = vshrl.u32 %v1229_v31, %v247_v20  ;;  %v256_v35 = vshrl.u32 %v1230_v34, %v247_v20  ;;  %v259_v38 = vshrl.u32 %v1231_v37, %v247_v20 }
  0x9f   : > { %v262_v41 = vshrl.u32 %v1232_v40, %v247_v20  ;;  %vm267_vm2 = vcmp.lt.s32.totalorder %v245_v24, 4  ;;  %v248_v48 = vshrl.u32 %v1227_v25, %v247_v20  ;;  %vm266_vm3 = vcmp.lt.s32.totalorder %v245_v24, 3 }
  0xa0   : > { %v251_v42 = vor.u32 %v250_v30, %v249_v26  ;;  %v254_v43 = vor.u32 %v253_v32, %v252_v28  ;;  %v257_v44 = vor.u32 %v256_v35, %v255_v33  ;;  %v260_v46 = vor.u32 %v259_v38, %v258_v36 }
  0xa1   : > { %v263_v47 = vor.u32 %v262_v41, %v261_v39  ;;  %v396_v54 = vadd.s32 1, %v1023_v45  ;;  %vm265_vm4 = vcmp.lt.s32.totalorder %v245_v24, 2  ;;  %v394_v2 = vor.u32 8388608, %v1337_v29 }
  0xa2   : > { %v269_v49 = vsel %vm267_vm2, %v257_v44, 2102212464  ;;  %v272_v50 = vsel %vm264_vm1, %v251_v42, %v254_v43  ;;  %v276_v51 = vsel %vm264_vm1, %v254_v43, %v257_v44  ;;  %v273_v52 = vsel %vm267_vm2, %v260_v46, 920167782 }
  0xa3   : > { %v277_v53 = vsel %vm267_vm2, %v263_v47, 1326507024  ;;  %v268_v55 = vsel %vm264_vm1, %v248_v48, %v251_v42  ;;  %v274_v56 = vsel %vm266_vm3, %v257_v44, %v273_v52  ;;  %v270_v58 = vsel %vm266_vm3, %v254_v43, %v269_v49 }
  0xa4   : > { %v278_v57 = vsel %vm266_vm3, %v260_v46, %v277_v53  ;;  %v275_v59 = vsel %vm265_vm4, %v272_v50, %v274_v56  ;;  %vm397_vm5 = vcmp.gt.s32.totalorder %v396_v54, 0  ;;  %v1349_v3 = vsel %vm265_vm4, %v268_v55, %v270_v58 }
  0xa5   : > { %v279_v60 = vsel %vm265_vm4, %v276_v51, %v278_v57  ;;  %v305_v63 = vand.u32 65535, %v275_v59  ;;  %v306_v1 = vshrl.u32 %v275_v59, 16  ;;  %v398_v8 = vsel %vm397_vm5, %v396_v54, 0 }
  0xa6   : > { %v283_v61 = vand.u32 65535, %v279_v60  ;;  %v284_v62 = vshrl.u32 %v279_v60, 16  ;;  %v400_v30 = vand.u32 31, %v398_v8  ;;  %v1356_v41 = vshrl.u32 %v398_v8, 5 }
  0xa7   : > { %v308_v11 = vmul.u32 %v306_v1, %v281_v21  ;;  %v309_v12 = vmul.u32 %v305_v63, %v282_v22  ;;  %v307_v18 = vmul.u32 %v305_v63, %v281_v21  ;;  %v310_v19 = vmul.u32 %v306_v1, %v282_v22 }
  0xa8   : > { %v286_v4 = vmul.u32 %v284_v62, %v281_v21  ;;  %v287_v7 = vmul.u32 %v283_v61, %v282_v22  ;;  %v285_v9 = vmul.u32 %v283_v61, %v281_v21  ;;  %v288_v10 = vmul.u32 %v284_v62, %v282_v22 }
  0xa9   : > { %v311_v24 = vshll.u32 %v308_v11, 16  ;;  %v312_v26 = vshrl.u32 %v308_v11, 16  ;;  %v313_v29 = vshll.u32 %v309_v12, 16  ;;  %v314_v33 = vshrl.u32 %v309_v12, 16 }
  0xaa   : > { %v289_v13 = vshll.u32 %v286_v4, 16  ;;  %v290_v16 = vshrl.u32 %v286_v4, 16  ;;  %v291_v20 = vshll.u32 %v287_v7, 16  ;;  %v292_v23 = vshrl.u32 %v287_v7, 16 }
  0xab   : > { %vm315_vm7 = vc.u32 %v307_v18, %v311_v24  ;;  %v317_v35 = vadd.s32 %v311_v24, %v307_v18  ;;  %v1353_v39 = vsub.s32 32, %v400_v30  ;;  %v403_v45 = vshll.u32 %v1227_v25, %v400_v30 }
  0xac   : > { %vm293_vm6 = vc.u32 %v285_v9, %v289_v13  ;;  %v295_v28 = vadd.s32 %v289_v13, %v285_v9  ;;  %v316_v38 = vsel %vm315_vm7, 1, %v1226_v0  ;;  %v406_v48 = vshll.u32 %v1228_v27, %v400_v30 }
  0xad   : > { %v294_v32 = vsel %vm293_vm6, 1, %v1226_v0  ;;  %v318_v22 = vadd.s32 %v316_v38, %v310_v19  ;;  %vm319_vm9 = vc.u32 %v317_v35, %v313_v29  ;;  %v1359_v44 = vadd.s32 %v317_v35, %v313_v29 }
  0xae   : > { %v296_v36 = vadd.s32 %v294_v32, %v288_v10  ;;  %vm297_vm8 = vc.u32 %v295_v28, %v291_v20  ;;  %v320_v43 = vsel %vm319_vm9, 1, %v1226_v0  ;;  %v404_v47 = vshrl.u32 %v1228_v27, %v1353_v39 }
  0xaf   : > { %v298_v21 = vsel %vm297_vm8, 1, %v1226_v0  ;;  %v322_v46 = vadd.s32 %v320_v43, %v318_v22  ;;  %v407_v49 = vshrl.u32 %v1229_v31, %v1353_v39  ;;  %v409_v51 = vshll.u32 %v1229_v31, %v400_v30 }
  0xb0   : > { %v300_v42 = vadd.s32 %v298_v21, %v296_v36  ;;  %v410_v52 = vshrl.u32 %v1230_v34, %v1353_v39  ;;  %v412_v53 = vshll.u32 %v1230_v34, %v400_v30  ;;  %v1371_v55 = vor.u32 %v404_v47, %v403_v45 }
  0xb1   : > { %v323_v54 = vadd.s32 %v322_v46, %v312_v26  ;;  %v1373_v56 = vor.u32 %v407_v49, %v406_v48  ;;  %v413_v57 = vshrl.u32 %v1231_v37, %v1353_v39  ;;  %v415_v59 = vshll.u32 %v1231_v37, %v400_v30 }
  0xb2   : > { %v301_v50 = vadd.s32 %v300_v42, %v290_v16  ;;  %v411_v58 = vor.u32 %v410_v52, %v409_v51  ;;  %v416_v31 = vshrl.u32 %v1232_v40, %v1353_v39  ;;  %vm418_vm11 = vcmp.lt.s32.totalorder %v1356_v41, 1 }
  0xb3   : > { %v324_v60 = vadd.s32 %v323_v54, %v314_v33  ;;  %v414_v61 = vor.u32 %v413_v57, %v412_v53  ;;  %v1385_v62 = vshll.u32 %v394_v2, 8  ;;  %v325_v63 = vmul.u32 %v1327_v15, %v1349_v3 }
  0xb4   : > { %v1377_v27 = vadd.s32 %v301_v50, %v292_v23  ;;  %v417_v34 = vor.u32 %v416_v31, %v415_v59  ;;  %vm421_vm12 = vcmp.lt.s32.totalorder %v1356_v41, 4  ;;  %v426_v37 = vsel %vm418_vm11, %v1371_v55, %v1373_v56 }
  0xb5   : > { %v328_v1 = vadd.s32 1, %v324_v60  ;;  %vm420_vm13 = vcmp.lt.s32.totalorder %v1356_v41, 3  ;;  %v427_v40 = vsel %vm421_vm12, %v414_v61, 920167782  ;;  %v430_v2 = vsel %vm418_vm11, %v1373_v56, %v411_v58 }
  0xb6   : > { %vm327_vm10 = vc.u32 %v1377_v27, %v1359_v44  ;;  %v431_v15 = vsel %vm421_vm12, %v417_v34, 1326507024  ;;  %vm419_vm14 = vcmp.lt.s32.totalorder %v1356_v41, 2  ;;  %v428_v4 = vsel %vm420_vm13, %v411_v58, %v427_v40 }
  0xb7   : > { %v329_v3 = vsel %vm327_vm10, %v328_v1, %v324_v60  ;;  %v432_v7 = vsel %vm420_vm13, %v414_v61, %v431_v15  ;;  %v429_v9 = vsel %vm419_vm14, %v426_v37, %v428_v4  ;;  %v435_v11 = vand.u32 65535, %v1385_v62 }
  0xb8   : > { %v330_v8 = vadd.s32 %v329_v3, %v325_v63  ;;  %v433_v10 = vsel %vm419_vm14, %v430_v2, %v432_v7  ;;  %v436_v12 = vshrl.u32 %v1385_v62, 16  ;;  %v460_v18 = vshrl.u32 %v429_v9, 16 }
  0xb9   : > { %v437_v13 = vand.u32 65535, %v433_v10  ;;  %v438_v16 = vshrl.u32 %v433_v10, 16  ;;  %v459_v20 = vand.u32 65535, %v429_v9  ;;  %v423_v31 = vsel %vm421_vm12, %v411_v58, 2102212464 }
  0xba   : > { %v331_v19 = vadd.s32 536870912, %v330_v8  ;;  %v462_v28 = vmul.u32 %v460_v18, %v435_v11  ;;  %v464_v47 = vmul.u32 %v460_v18, %v436_v12  ;;  %v402_v60 = vshrl.u32 %v1227_v25, %v1353_v39 }
  0xbb   : > { %v440_v23 = vmul.u32 %v438_v16, %v435_v11  ;;  %v441_v24 = vmul.u32 %v437_v13, %v436_v12  ;;  %v439_v29 = vmul.u32 %v437_v13, %v435_v11  ;;  %v442_v33 = vmul.u32 %v438_v16, %v436_v12 }
  0xbc   : > { %v1413_v26 = vshrl.u32 %v331_v19, 30  ;;  %v461_v35 = vmul.u32 %v459_v20, %v435_v11  ;;  %v465_v36 = vshll.u32 %v462_v28, 16  ;;  %v463_v22 = vmul.u32 %v459_v20, %v436_v12 }
  0xbd   : > { %v443_v30 = vshll.u32 %v440_v23, 16  ;;  %v445_v38 = vshll.u32 %v441_v24, 16  ;;  %v444_v53 = vshrl.u32 %v440_v23, 16  ;;  %v446_v61 = vshrl.u32 %v441_v24, 16 }
  0xbe   : > { %v333_v32 = vshll.u32 %v1413_v26, 30  ;;  %vm469_vm1 = vc.u32 %v461_v35, %v465_v36  ;;  %v467_v49 = vshll.u32 %v463_v22, 16  ;;  %v471_v51 = vadd.s32 %v465_v36, %v461_v35 }
  0xbf   : > { %vm447_vm15 = vc.u32 %v439_v29, %v443_v30  ;;  %v449_v21 = vadd.s32 %v443_v30, %v439_v29  ;;  %v470_v50 = vsel %vm469_vm1, 1, %v1226_v0  ;;  %v466_v37 = vshrl.u32 %v462_v28, 16 }
  0xc0   : > { %v334_v42 = vsub.s32 %v330_v8, %v333_v32  ;;  %v448_v43 = vsel %vm447_vm15, 1, %v1226_v0  ;;  %v472_v57 = vadd.s32 %v470_v50, %v464_v47  ;;  %vm473_vm3 = vc.u32 %v471_v51, %v467_v49 }
  0xc1   : > { %v450_v45 = vadd.s32 %v448_v43, %v442_v33  ;;  %vm451_vm0 = vc.u32 %v449_v21, %v445_v38  ;;  %v474_v63 = vsel %vm473_vm3, 1, %v1226_v0  ;;  %v422_v2 = vsel %vm418_vm11, %v402_v60, %v1371_v55 }
  0xc2   : > { %vm335_vm2 = vcmp.lt.s32.totalorder %v334_v42, 0  ;;  %v336_v46 = vsub.s32 0, %v334_v42  ;;  %v452_v48 = vsel %vm451_vm0, 1, %v1226_v0  ;;  %v476_v40 = vadd.s32 %v474_v63, %v472_v57 }
  0xc3   : > { %v454_v54 = vadd.s32 %v452_v48, %v450_v45  ;;  %v424_v15 = vsel %vm420_vm13, %v1373_v56, %v423_v31  ;;  %v468_v3 = vshrl.u32 %v463_v22, 16  ;;  %v326_v25 = vadd.s32 %v1359_v44, %v1377_v27 }
  0xc4   : > { %v337_v52 = vsel %vm335_vm2, %v336_v46, %v334_v42  ;;  %v477_v4 = vadd.s32 %v476_v40, %v466_v37  ;;  %v475_v0 = vadd.s32 %v471_v51, %v467_v49  ;;  %v425_v9 = vsel %vm419_vm14, %v422_v2, %v424_v15 }
  0xc5   : > { %v338_v59 = vclz %v337_v52  ;;  %v455_v34 = vadd.s32 %v454_v54, %v444_v53  ;;  %v479_v13 = vmul.u32 %v1385_v62, %v425_v9  ;;  %vm234_vm6 = vcmp.lt.s32.totalorder %v1319_v5, 0 }
  0xc6   : > { %v478_v10 = vadd.s32 %v477_v4, %v468_v3  ;;  %vm233_vm7 = vcmp.le.f32.partialorder %v232_v6, 0.7853982  ;;  %v356_v33 = vsub.s32 4, %v1413_v26  ;;  %vm375_vm0 = vweird.f32 %v1319_v5 }
  0xc7   : > { %v1021_v1 = vadd.s32 4294967294, %v338_v59  ;;  %v456_v58 = vadd.s32 %v455_v34, %v446_v61  ;;  %vm388_vm1 = vcmp.lt.s32.totalorder %v1325_v14, 0  ;;  %vm387_vm2 = vcmp.le.f32.partialorder %v386_v17, 0.7853982 }
  0xc8   : > { %v482_v56 = vadd.s32 1, %v478_v10  ;;  %v357_v45 = vsel %vm234_vm6, %v356_v33, %v1413_v26 }
  0xc9   : > { %vm1022_vm4 = vcmp.lt.s32.totalorder %v1021_v1, 0  ;;  %vm481_vm5 = vc.u32 %v456_v58, %v475_v0  ;;  %v359_v49 = vsel %vm233_vm7, 0, %v357_v45  ;;  %v480_v53 = vadd.s32 %v475_v0, %v456_v58 }
  0xca   : > { %v341_v39 = vsel %vm1022_vm4, 0, %v1021_v1  ;;  %v483_v19 = vsel %vm481_vm5, %v482_v56, %v478_v10  ;;  %v686_v59 = vadd.s32 3, %v359_v49  ;;  %v376_v26 = vand.u32 3, %v359_v49 }
  0xcb   : > { %v342_v7 = vsub.s32 32, %v341_v39  ;;  %v346_v8 = vsub.s32 4294967266, %v341_v39  ;;  %v343_v55 = vshll.u32 %v334_v42, %v341_v39  ;;  %v484_v20 = vadd.s32 %v483_v19, %v479_v13 }
  0xcc   : > { %v687_v15 = vand.u32 3, %v686_v59  ;;  %vm377_vm10 = vcmp.lt.s32.totalorder %v376_v26, 2  ;;  %vm378_vm11 = vcmp.eq.s32.totalorder %v376_v26, 0  ;;  %vm381_vm12 = vcmp.eq.s32.totalorder %v376_v26, 2 }
  0xcd   : > { %v344_v11 = vshrl.u32 %v326_v25, %v342_v7  ;;  %v347_v12 = vadd.s32 127, %v346_v8  ;;  %v485_v27 = vadd.s32 536870912, %v484_v20 }
  0xce   : > { %vm688_vm13 = vcmp.lt.s32.totalorder %v687_v15, 2  ;;  %vm689_vm14 = vcmp.eq.s32.totalorder %v687_v15, 0  ;;  %vm692_vm15 = vcmp.eq.s32.totalorder %v687_v15, 2 }
  0xcf   : > { %v345_v16 = vor.u32 %v344_v11, %v343_v55  ;;  %v348_v18 = vshll.u32 %v347_v12, 23  ;;  %v1435_v28 = vshrl.u32 %v485_v27, 30 }
  0xd1   : > { %v349_v44 = vor.u32 4788187, %v348_v18  ;;  %v352_v24 = vcvt.s32.f32 %v345_v16  ;;  %v487_v29 = vshll.u32 %v1435_v28, 30 }
  0xd3   : > { %v350_v23 = vand.u32 2147483647, %v349_v44  ;;  %v488_v32 = vsub.s32 %v484_v20, %v487_v29 }
  0xd5   : > { %v353_v41 = vmul.f32 %v352_v24, %v350_v23  ;;  %vm489_vm8 = vcmp.lt.s32.totalorder %v488_v32, 0  ;;  %v490_v36 = vsub.s32 0, %v488_v32 }
  0xd7   : > { %v354_v30 = vxor.u32 2147483648, %v353_v41  ;;  %v491_v21 = vsel %vm489_vm8, %v490_v36, %v488_v32 }
  0xd8   : > { %v492_v42 = vclz %v491_v21 }
  0xd9   : > { %v355_v62 = vsel %vm234_vm6, %v354_v30, %v353_v41 }
  0xda   : > { %v358_v35 = vsel %vm233_vm7, %v1319_v5, %v355_v62  ;;  %v1024_v47 = vadd.s32 4294967294, %v492_v42  ;;  %v510_v5 = vsub.s32 4, %v1435_v28 }
  0xdb   : > { %v360_v38 = vmul.f32 %v358_v35, %v358_v35 }
  0xdc   : > { %vm1025_vm9 = vcmp.lt.s32.totalorder %v1024_v47, 0  ;;  %v511_v24 = vsel %vm388_vm1, %v510_v5, %v1435_v28 }
  0xdd   : > { %v368_v22 = vmul.f32 -0.00019511016, %v360_v38  ;;  %v361_v43 = vmul.f32 -0.001358992, %v360_v38  ;;  %v495_v51 = vsel %vm1025_vm9, 0, %v1024_v47  ;;  %v513_v30 = vsel %vm387_vm2, 0, %v511_v24 }
  0xde   : > { %v496_v54 = vsub.s32 32, %v495_v51  ;;  %v500_v57 = vsub.s32 4294967266, %v495_v51  ;;  %v497_v61 = vshll.u32 %v488_v32, %v495_v51  ;;  %vm529_vm9 = vweird.f32 %v1325_v14 }
  0xdf   : > { %v369_v46 = vadd.f32 0.008332121, %v368_v22  ;;  %v362_v48 = vadd.f32 0.041655596, %v361_v43  ;;  %v530_v22 = vand.u32 3, %v513_v30 }
  0xe0   : > { %v498_v34 = vshrl.u32 %v480_v53, %v496_v54  ;;  %v501_v63 = vadd.s32 127, %v500_v57 }
  0xe1   : > { %v370_v50 = vmul.f32 %v369_v46, %v360_v38  ;;  %v363_v6 = vmul.f32 %v362_v48, %v360_v38  ;;  %vm531_vm3 = vcmp.lt.s32.totalorder %v530_v22, 2  ;;  %vm532_vm4 = vcmp.eq.s32.totalorder %v530_v22, 0 }
  0xe2   : > { %v499_v40 = vor.u32 %v498_v34, %v497_v61  ;;  %v502_v2 = vshll.u32 %v501_v63, 23  ;;  %vm535_vm5 = vcmp.eq.s32.totalorder %v530_v22, 2 }
  0xe3   : > { %v371_v52 = vadd.f32 -0.16666654, %v370_v50  ;;  %v364_v31 = vadd.f32 -0.4999988, %v363_v6 }
  0xe4   : > { %v503_v58 = vor.u32 4788187, %v502_v2  ;;  %v506_v7 = vcvt.s32.f32 %v499_v40 }
  0xe5   : > { %v372_v60 = vmul.f32 %v371_v52, %v360_v38  ;;  %v365_v1 = vmul.f32 %v364_v31, %v360_v38 }
  0xe6   : > { %v504_v0 = vand.u32 2147483647, %v503_v58 }
  0xe7   : > { %v373_v37 = vadd.f32 1.0, %v372_v60  ;;  %v366_v3 = vadd.f32 1.0, %v365_v1 }
  0xe8   : > { %v507_v9 = vmul.f32 %v506_v7, %v504_v0 }
  0xe9   : > { %v374_v4 = vmul.f32 %v373_v37, %v358_v35  ;;  %v382_v25 = vxor.u32 2147483648, %v366_v3  ;;  %v841_v35 = vadd.s32 3, %v513_v30 }
  0xea   : > { %v508_v13 = vxor.u32 2147483648, %v507_v9 }
  0xeb   : > { %v379_v39 = vxor.u32 2147483648, %v374_v4  ;;  %v383_v8 = vsel %vm381_vm12, %v382_v25, %v374_v4  ;;  %v694_v11 = vsel %vm692_vm15, %v382_v25, %v374_v4  ;;  %v842_v28 = vand.u32 3, %v841_v35 }
  0xec   : > { %v509_v19 = vsel %vm388_vm1, %v508_v13, %v507_v9 }
  0xed   : > { %v380_v10 = vsel %vm378_vm11, %v366_v3, %v379_v39  ;;  %v691_v55 = vsel %vm689_vm14, %v366_v3, %v379_v39  ;;  %v512_v20 = vsel %vm387_vm2, %v1325_v14, %v509_v19  ;;  %vm843_vm6 = vcmp.lt.s32.totalorder %v842_v28, 2 }
  0xee   : > { %v384_v12 = vsel %vm377_vm10, %v380_v10, %v383_v8  ;;  %v695_v56 = vsel %vm688_vm13, %v691_v55, %v694_v11  ;;  %v514_v44 = vmul.f32 %v512_v20, %v512_v20  ;;  %vm844_vm7 = vcmp.eq.s32.totalorder %v842_v28, 0 }
  0xef   : > { %v385_v16 = vsel %vm375_vm0, nan, %v384_v12  ;;  %v696_v18 = vsel %vm375_vm0, nan, %v695_v56  ;;  %vm847_vm8 = vcmp.eq.s32.totalorder %v842_v28, 2 }
  0xf0   : > { %540 = vst [vmem:[%s1451_s8] sm:$0xff] %v385_v16  ;;  %v522_v27 = vmul.f32 -0.00019511016, %v514_v44  ;;  %v515_v23 = vmul.f32 -0.001358992, %v514_v44 }
  0xf1   : > { %852 = vst [vmem:[%s1456_s9] sm:$0xff] %v696_v18 }
  0xf2   : > { %v523_v41 = vadd.f32 0.008332121, %v522_v27  ;;  %v516_v29 = vadd.f32 0.041655596, %v515_v23 }
  0xf4   : > { %v524_v17 = vmul.f32 %v523_v41, %v514_v44  ;;  %v517_v32 = vmul.f32 %v516_v29, %v514_v44 }
  0xf6   : > { %v525_v62 = vadd.f32 -0.16666654, %v524_v17  ;;  %v518_v33 = vadd.f32 -0.4999988, %v517_v32 }
  0xf8   : > { %v526_v36 = vmul.f32 %v525_v62, %v514_v44  ;;  %v519_v38 = vmul.f32 %v518_v33, %v514_v44 }
  0xfa   : > { %v527_v21 = vadd.f32 1.0, %v526_v36  ;;  %v520_v42 = vadd.f32 1.0, %v519_v38 }
  0xfc   : > { %v528_v43 = vmul.f32 %v527_v21, %v512_v20  ;;  %v536_v45 = vxor.u32 2147483648, %v520_v42 }
  0xfe   : > { %v533_v46 = vxor.u32 2147483648, %v528_v43  ;;  %v537_v48 = vsel %vm535_vm5, %v536_v45, %v528_v43  ;;  %v849_v50 = vsel %vm847_vm8, %v536_v45, %v528_v43 }
 0x100   : > { %v534_v47 = vsel %vm532_vm4, %v520_v42, %v533_v46  ;;  %v846_v49 = vsel %vm844_vm7, %v520_v42, %v533_v46 }
 0x101   : > { %v538_v6 = vsel %vm531_vm3, %v534_v47, %v537_v48  ;;  %v850_v51 = vsel %vm843_vm6, %v846_v49, %v849_v50 }
 0x102   : > { %v539_v52 = vsel %vm529_vm9, nan, %v538_v6  ;;  %v851_v53 = vsel %vm529_vm9, nan, %v850_v51 }
 0x103   : > { %541 = vst [vmem:[%s1451_s8 + $0x8] sm:$0xff] %v539_v52 }
 0x104   : > { %1141 = shalt.err (!%p1138_p5)
}
 0x105   : > { %s1233_s8 = smov 128   ;;  %s1234_s26 = smov 8   ;;  %853 = vst [vmem:[%s1456_s9 + $0x8] sm:$0xff] %v851_v53 }
 0x106   : > { %1043 = dma.vmem_to_hbm [thread:$0]  (%p1295_p4), %s1470_s21, 256, %s1472_s23, %s855_s30, %s1233_s8, %s1233_s8, %s1234_s26  }
 0x107   : > { %s860_s27 = scalar_lea.sflag [#allocation5], %s1445_s6  ;;  %s1156_s15 = sshra.s32 %s1479_s29, 4  ;;  %s1157_s15 = int_to_ptr.hbm [resolvable:$true] %s1156_s15 }
 0x108   : > { %s1158_s4 = scalar_lea.hbm %s1157_s15, 16  ;;  %s1162_s10 = scalar_lea.hbm %s1535_s3, 32 }
 0x109   : > { %p1159_p6 = scmp.ne.s32.totalorder %s1157_s15, %s1158_s4  ;;  %p1163_p10 = scmp.lt.s32.totalorder %s1157_s15, %s1535_s3 }
 0x10a   : > { %p1164_p11 = scmp.lt.s32.totalorder %s1162_s10, %s1158_s4 }
 0x10b   : > { %p1160_p7 = pnand %p1159_p6, %p1295_p4 }
 0x10c   : > { %p1165_p12 = por %p1164_p11, %p1163_p10 }
 0x10d   : > { %p1161_p9 = pneg %p1160_p7 }
 0x10f   : > { %p1166_p13 = pnand %p1165_p12, %p1161_p9 }
 0x111   : > { %1169 = shalt.err (!%p1166_p13)
}
 0x112   : > { %1044 = dma.vmem_to_hbm [thread:$0]  (%p1295_p4), %s1477_s28, 256, %s1479_s29, %s860_s27, %s1233_s8, %s1233_s8, %s1234_s26  }
 0x113 PF: > { %p1054_p0 = scmp.ge.s32.totalorder %s1224_s17, 2  ;;  %s910_s6 = sand.u32 1, %s1204_s12  }
 0x114   : > { %s911_s9 = scalar_lea.sflag [#allocation3], %s910_s6 }
 0x115   : > { %p1048_p1 = pnand %p1054_p0, %p1302_p8 }
 0x117   : > { %p1049_p2 = pneg %p1048_p1 }
 0x119   : > { %1195 = dma.done.wait (%p1049_p2), %s911_s9, 256  }
 0x11a   : > { %1197 = vsyncadd (%p1049_p2), %s911_s9, 4294967040  ;;  %s921_s21 = scalar_lea.sflag [#allocation5], %s910_s6 }
 0x11b   : > { %1199 = dma.done.wait (%p1049_p2), %s921_s21, 256  }
 0x11c   : > { %1201 = vsyncadd (%p1049_p2), %s921_s21, 4294967040  ;;  %s20_s17 = sadd.s32 1, %s1224_s17   ;;  %s1538_s12 = smov %s1208_s13 }
 0x11d   : > { %p17_p3 = scmp.ge.s32.totalorder %s20_s17, 4   ;;  %s1539_s13 = smov %s1212_s14 }
 0x11e   : > { %s1540_s14 = smov %s1308_s25  ;;  %s1541_s15 = smov %s1220_s16 }
 0x11f   : > { %s1542_s16 = smov %s1544_s20  ;;  %19 = sbr.rel (!%p17_p3) target bundleno = 6 (0x6), region = 80 }
 0x124   :  { %927 = vsyncpa [#allocation3], 1 }
 0x125   :  { %929 = vsyncpa [#allocation3 + $0x1], 1 }
 0x126   :  { %930 = vsyncpa [#allocation5], 1 }
 0x127   :  { %932 = vsyncpa [#allocation5 + $0x1], 1 }

</bundles_post_ra>
